<compile_context>
chip_gen: v7x
topology: tpu7x:2x2x1
jax: 0.10.0
libtpu: 0.0.40
codegen_flags: <defaults>
</compile_context>

<pallas_src>
import jax
import jax.numpy as jnp
from jax.experimental import pallas as pl
from jax.experimental.pallas import tpu as pltpu

LANE = 128      # pad every feature dimension to a multiple of the TPU lane width
SUBLANE = 8     # fp32 sublane: batch tiles must be multiples of 8


def _round_up(x, m):
    return (x + m - 1) // m * m


# ---------------------------------------------------------------------------
# Fused Pallas kernel: the entire MLP forward in a single pallas_call.
#   refs = (x_ref, w1, b1, ..., wH, bH, w_head, b_head, o_ref)
# Weights are bf16 (MXU-native), biases fp32, accumulation fp32.
# ---------------------------------------------------------------------------
def _make_fused_mlp_kernel(n_hidden):
    def kernel(*refs):
        x_ref = refs[0]
        o_ref = refs[-1]
        wb = refs[1:-1]
        h = x_ref[...].astype(jnp.bfloat16)
        for i in range(n_hidden):
            w_ref, b_ref = wb[2 * i], wb[2 * i + 1]
            y = jnp.dot(h, w_ref[...], preferred_element_type=jnp.float32)
            y = y + b_ref[...]                      # folded bias + eval-mode BN
            y = jnp.where(y > 0, y, 0.01 * y)       # LeakyReLU(0.01)
            h = y.astype(jnp.bfloat16)              # Dropout(p=0.5) == identity in eval
        wh_ref, bh_ref = wb[-2], wb[-1]
        out = jnp.dot(h, wh_ref[...], preferred_element_type=jnp.float32)
        o_ref[...] = (out + bh_ref[...]).astype(o_ref.dtype)
    return kernel


def fused_mlp_forward(x, padded_layers, batch_tile=512):
    """padded_layers: list of (w_bf16 padded, b_f32 padded); last entry is the head."""
    B, d_in = x.shape
    d0_pad = padded_layers[0][0].shape[0]
    d_out_pad = padded_layers[-1][0].shape[1]
    n_hidden = len(padded_layers) - 1

    # Batch tiling: weights stay VMEM-resident (constant index_map); x / out are
    # tiled along batch and the axis is 'parallel' (megacore / v7x 2-TC sharding).
    tb = min(batch_tile, _round_up(B, SUBLANE))
    b_pad = _round_up(B, tb)

    x_p = jnp.zeros((b_pad, d0_pad), jnp.float32).at[:B, :d_in].set(x.astype(jnp.float32))

    in_specs = [pl.BlockSpec((tb, d0_pad), lambda i: (i, 0))]
    flat_args = [x_p]
    for (w, b) in padded_layers:
        in_specs.append(pl.BlockSpec(w.shape, lambda i: (0, 0)))   # resident weight
        in_specs.append(pl.BlockSpec(b.shape, lambda i: (0, 0)))   # resident bias
        flat_args.extend([w, b])

    out = pl.pallas_call(
        _make_fused_mlp_kernel(n_hidden),
        out_shape=jax.ShapeDtypeStruct((b_pad, d_out_pad), jnp.float32),
        grid=(b_pad // tb,),
        in_specs=in_specs,
        out_specs=pl.BlockSpec((tb, d_out_pad), lambda i: (i, 0)),
        compiler_params=pltpu.CompilerParams(
            dimension_semantics=("parallel",),      # shard batch tiles across cores
            vmem_limit_bytes=32 * 1024 * 1024,      # safe on v7x's 64 MiB per-TC VMEM
        ),
    )(*flat_args)
    return out[:B, :1]


@jax.jit
def nn_forward(x, padded_layers):
    return fused_mlp_forward(x, padded_layers)


# ---------------------------------------------------------------------------
# Parameter construction: PyTorch-default-init Linear + deterministic BN running
# stats, folded (eval mode) into per-layer (W, b) with W stored as (in, out).
# ---------------------------------------------------------------------------
def make_params(units, key):
    layers = []
    eps = 1e-5
    for i in range(len(units) - 1):
        fan_in, fan_out = units[i], units[i + 1]
        key, kw, kb, kg, kbe, km, kv = jax.random.split(key, 7)
        bound = 1.0 / jnp.sqrt(jnp.float32(fan_in))
        w = jax.random.uniform(kw, (fan_in, fan_out), jnp.float32, -bound, bound)
        b = jax.random.uniform(kb, (1, fan_out), jnp.float32, -bound, bound)
        gamma = 1.0 + 0.1 * jax.random.normal(kg, (1, fan_out), jnp.float32)
        beta = 0.1 * jax.random.normal(kbe, (1, fan_out), jnp.float32)
        running_mean = 0.1 * jax.random.normal(km, (1, fan_out), jnp.float32)
        running_var = 1.0 + 0.1 * jax.random.uniform(kv, (1, fan_out), jnp.float32)
        bn_scale = gamma / jnp.sqrt(running_var + eps)
        bn_shift = beta - running_mean * bn_scale
        layers.append((w * bn_scale, b * bn_scale + bn_shift))      # fold BN into Linear
    # final head Linear(units[-1], 1): no BN, no activation
    fan_in = units[-1]
    key, kw, kb = jax.random.split(key, 3)
    bound = 1.0 / jnp.sqrt(jnp.float32(fan_in))
    w_head = jax.random.uniform(kw, (fan_in, 1), jnp.float32, -bound, bound)
    b_head = jax.random.uniform(kb, (1, 1), jnp.float32, -bound, bound)
    layers.append((w_head, b_head))
    return layers


def pad_params(layers):
    """Zero-pad feature dims to LANE multiples; cast weights to bf16, biases stay f32."""
    padded = []
    for (w, b) in layers:
        k, n = w.shape
        k_pad, n_pad = _round_up(k, LANE), _round_up(n, LANE)
        w_p = jnp.zeros((k_pad, n_pad), jnp.float32).at[:k, :n].set(w)
        b_p = jnp.zeros((1, n_pad), jnp.float32).at[:, :n].set(b)   # padded lanes stay 0
        padded.append((w_p.astype(jnp.bfloat16), b_p))
    return padded


# ---------------------------------------------------------------------------
# Pure-JAX reference with identical bf16/f32 numerics (for verification)
# ---------------------------------------------------------------------------
def reference_forward(x, padded_layers):
    d0_pad = padded_layers[0][0].shape[0]
    h = jnp.zeros((x.shape[0], d0_pad), jnp.float32).at[:, :x.shape[1]].set(x)
    for (w, b) in padded_layers[:-1]:
        y = jnp.dot(h.astype(jnp.bfloat16), w, preferred_element_type=jnp.float32) + b
        h = jnp.where(y > 0, y, 0.01 * y)
    w, b = padded_layers[-1]
    y = jnp.dot(h.astype(jnp.bfloat16), w, preferred_element_type=jnp.float32) + b
    return y[:, :1]


# ---------------------------------------------------------------------------
if __name__ == "__main__":
    # Small analog of the original units = [INPUT_SIZE, 500, 200, 150, 50];
    # the Lorentz system has 3 state variables -> INPUT_SIZE = 3.
    units = [3, 32, 16, 16, 8]
    batch = 8

    key = jax.random.PRNGKey(0)
    key, kx, kp = jax.random.split(key, 3)
    x = jax.random.normal(kx, (batch, units[0]), jnp.float32)

    layers = make_params(units, kp)
    padded_layers = pad_params(layers)

    out = nn_forward(x, padded_layers)
    out = jax.block_until_ready(out)
    assert out.shape == (batch, 1), out.shape

    ref = reference_forward(x, padded_layers)
    err = float(jnp.max(jnp.abs(out - ref)))
    assert jnp.allclose(out, ref, atol=1e-2, rtol=1e-2), err

    print("KERNEL_OK")
</pallas_src>

<mosaic_0001>
module attributes {stable_mosaic.version = 11 : i64} {
  func.func @kernel(%arg0: i32, %arg1: memref<8x128xf32, #tpu.memory_space<vmem>>, %arg2: memref<128x128xbf16, #tpu.memory_space<vmem>>, %arg3: memref<1x128xf32, #tpu.memory_space<vmem>>, %arg4: memref<128x128xbf16, #tpu.memory_space<vmem>>, %arg5: memref<1x128xf32, #tpu.memory_space<vmem>>, %arg6: memref<128x128xbf16, #tpu.memory_space<vmem>>, %arg7: memref<1x128xf32, #tpu.memory_space<vmem>>, %arg8: memref<128x128xbf16, #tpu.memory_space<vmem>>, %arg9: memref<1x128xf32, #tpu.memory_space<vmem>>, %arg10: memref<128x128xbf16, #tpu.memory_space<vmem>>, %arg11: memref<1x128xf32, #tpu.memory_space<vmem>>, %arg12: memref<8x128xf32, #tpu.memory_space<vmem>>) attributes {dimension_semantics = [#tpu.dimension_semantics<parallel>], iteration_bounds = array<i64: 1>, scalar_prefetch = 0 : i64, scratch_operands = 0 : i64, tpu.core_type = #tpu.core_type<tc>, window_params = [{transform_indices = @transform_0, window_bounds = array<i64: 8, 128>}, {pipeline_mode = #tpu.pipeline_mode<synchronous>, transform_indices = @transform_1, window_bounds = array<i64: 128, 128>}, {pipeline_mode = #tpu.pipeline_mode<synchronous>, transform_indices = @transform_2, window_bounds = array<i64: 1, 128>}, {pipeline_mode = #tpu.pipeline_mode<synchronous>, transform_indices = @transform_3, window_bounds = array<i64: 128, 128>}, {pipeline_mode = #tpu.pipeline_mode<synchronous>, transform_indices = @transform_4, window_bounds = array<i64: 1, 128>}, {pipeline_mode = #tpu.pipeline_mode<synchronous>, transform_indices = @transform_5, window_bounds = array<i64: 128, 128>}, {pipeline_mode = #tpu.pipeline_mode<synchronous>, transform_indices = @transform_6, window_bounds = array<i64: 1, 128>}, {pipeline_mode = #tpu.pipeline_mode<synchronous>, transform_indices = @transform_7, window_bounds = array<i64: 128, 128>}, {pipeline_mode = #tpu.pipeline_mode<synchronous>, transform_indices = @transform_8, window_bounds = array<i64: 1, 128>}, {pipeline_mode = #tpu.pipeline_mode<synchronous>, transform_indices = @transform_9, window_bounds = array<i64: 128, 128>}, {pipeline_mode = #tpu.pipeline_mode<synchronous>, transform_indices = @transform_10, window_bounds = array<i64: 1, 128>}, {transform_indices = @transform_11, window_bounds = array<i64: 8, 128>}]} {
    %c0 = arith.constant 0 : index
    %c0_0 = arith.constant 0 : index
    %0 = vector.load %arg1[%c0, %c0_0] : memref<8x128xf32, #tpu.memory_space<vmem>>, vector<8x128xf32>
    %1 = arith.truncf %0 : vector<8x128xf32> to vector<8x128xbf16>
    %c0_1 = arith.constant 0 : index
    %c0_2 = arith.constant 0 : index
    %2 = vector.load %arg2[%c0_1, %c0_2] : memref<128x128xbf16, #tpu.memory_space<vmem>>, vector<128x128xbf16>
    %cst = arith.constant dense<0.000000e+00> : vector<8x128xf32>
    %3 = tpu.matmul %1, %2, %cst {dimension_numbers = #tpu.dot_dimension_numbers<[1], [0], [0], [1], [0, 0, 1, 1], [], []>} : vector<8x128xbf16>, vector<128x128xbf16>, vector<8x128xf32> -> vector<8x128xf32>
    %c0_3 = arith.constant 0 : index
    %c0_4 = arith.constant 0 : index
    %4 = vector.load %arg3[%c0_3, %c0_4] : memref<1x128xf32, #tpu.memory_space<vmem>>, vector<1x128xf32>
    %5 = vector.broadcast %4 : vector<1x128xf32> to vector<8x128xf32>
    %6 = arith.addf %3, %5 : vector<8x128xf32>
    %cst_5 = arith.constant 0.000000e+00 : f32
    %7 = vector.broadcast %cst_5 : f32 to vector<8x128xf32>
    %8 = arith.cmpf ogt, %6, %7 : vector<8x128xf32>
    %cst_6 = arith.constant 0.00999999977 : f32
    %9 = vector.broadcast %cst_6 : f32 to vector<8x128xf32>
    %10 = arith.mulf %9, %6 : vector<8x128xf32>
    %11 = arith.select %8, %6, %10 : vector<8x128xi1>, vector<8x128xf32>
    %12 = arith.truncf %11 : vector<8x128xf32> to vector<8x128xbf16>
    %c0_7 = arith.constant 0 : index
    %c0_8 = arith.constant 0 : index
    %13 = vector.load %arg4[%c0_7, %c0_8] : memref<128x128xbf16, #tpu.memory_space<vmem>>, vector<128x128xbf16>
    %cst_9 = arith.constant dense<0.000000e+00> : vector<8x128xf32>
    %14 = tpu.matmul %12, %13, %cst_9 {dimension_numbers = #tpu.dot_dimension_numbers<[1], [0], [0], [1], [0, 0, 1, 1], [], []>} : vector<8x128xbf16>, vector<128x128xbf16>, vector<8x128xf32> -> vector<8x128xf32>
    %c0_10 = arith.constant 0 : index
    %c0_11 = arith.constant 0 : index
    %15 = vector.load %arg5[%c0_10, %c0_11] : memref<1x128xf32, #tpu.memory_space<vmem>>, vector<1x128xf32>
    %16 = vector.broadcast %15 : vector<1x128xf32> to vector<8x128xf32>
    %17 = arith.addf %14, %16 : vector<8x128xf32>
    %cst_12 = arith.constant 0.000000e+00 : f32
    %18 = vector.broadcast %cst_12 : f32 to vector<8x128xf32>
    %19 = arith.cmpf ogt, %17, %18 : vector<8x128xf32>
    %cst_13 = arith.constant 0.00999999977 : f32
    %20 = vector.broadcast %cst_13 : f32 to vector<8x128xf32>
    %21 = arith.mulf %20, %17 : vector<8x128xf32>
    %22 = arith.select %19, %17, %21 : vector<8x128xi1>, vector<8x128xf32>
    %23 = arith.truncf %22 : vector<8x128xf32> to vector<8x128xbf16>
    %c0_14 = arith.constant 0 : index
    %c0_15 = arith.constant 0 : index
    %24 = vector.load %arg6[%c0_14, %c0_15] : memref<128x128xbf16, #tpu.memory_space<vmem>>, vector<128x128xbf16>
    %cst_16 = arith.constant dense<0.000000e+00> : vector<8x128xf32>
    %25 = tpu.matmul %23, %24, %cst_16 {dimension_numbers = #tpu.dot_dimension_numbers<[1], [0], [0], [1], [0, 0, 1, 1], [], []>} : vector<8x128xbf16>, vector<128x128xbf16>, vector<8x128xf32> -> vector<8x128xf32>
    %c0_17 = arith.constant 0 : index
    %c0_18 = arith.constant 0 : index
    %26 = vector.load %arg7[%c0_17, %c0_18] : memref<1x128xf32, #tpu.memory_space<vmem>>, vector<1x128xf32>
    %27 = vector.broadcast %26 : vector<1x128xf32> to vector<8x128xf32>
    %28 = arith.addf %25, %27 : vector<8x128xf32>
    %cst_19 = arith.constant 0.000000e+00 : f32
    %29 = vector.broadcast %cst_19 : f32 to vector<8x128xf32>
    %30 = arith.cmpf ogt, %28, %29 : vector<8x128xf32>
    %cst_20 = arith.constant 0.00999999977 : f32
    %31 = vector.broadcast %cst_20 : f32 to vector<8x128xf32>
    %32 = arith.mulf %31, %28 : vector<8x128xf32>
    %33 = arith.select %30, %28, %32 : vector<8x128xi1>, vector<8x128xf32>
    %34 = arith.truncf %33 : vector<8x128xf32> to vector<8x128xbf16>
    %c0_21 = arith.constant 0 : index
    %c0_22 = arith.constant 0 : index
    %35 = vector.load %arg8[%c0_21, %c0_22] : memref<128x128xbf16, #tpu.memory_space<vmem>>, vector<128x128xbf16>
    %cst_23 = arith.constant dense<0.000000e+00> : vector<8x128xf32>
    %36 = tpu.matmul %34, %35, %cst_23 {dimension_numbers = #tpu.dot_dimension_numbers<[1], [0], [0], [1], [0, 0, 1, 1], [], []>} : vector<8x128xbf16>, vector<128x128xbf16>, vector<8x128xf32> -> vector<8x128xf32>
    %c0_24 = arith.constant 0 : index
    %c0_25 = arith.constant 0 : index
    %37 = vector.load %arg9[%c0_24, %c0_25] : memref<1x128xf32, #tpu.memory_space<vmem>>, vector<1x128xf32>
    %38 = vector.broadcast %37 : vector<1x128xf32> to vector<8x128xf32>
    %39 = arith.addf %36, %38 : vector<8x128xf32>
    %cst_26 = arith.constant 0.000000e+00 : f32
    %40 = vector.broadcast %cst_26 : f32 to vector<8x128xf32>
    %41 = arith.cmpf ogt, %39, %40 : vector<8x128xf32>
    %cst_27 = arith.constant 0.00999999977 : f32
    %42 = vector.broadcast %cst_27 : f32 to vector<8x128xf32>
    %43 = arith.mulf %42, %39 : vector<8x128xf32>
    %44 = arith.select %41, %39, %43 : vector<8x128xi1>, vector<8x128xf32>
    %45 = arith.truncf %44 : vector<8x128xf32> to vector<8x128xbf16>
    %c0_28 = arith.constant 0 : index
    %c0_29 = arith.constant 0 : index
    %46 = vector.load %arg10[%c0_28, %c0_29] : memref<128x128xbf16, #tpu.memory_space<vmem>>, vector<128x128xbf16>
    %cst_30 = arith.constant dense<0.000000e+00> : vector<8x128xf32>
    %47 = tpu.matmul %45, %46, %cst_30 {dimension_numbers = #tpu.dot_dimension_numbers<[1], [0], [0], [1], [0, 0, 1, 1], [], []>} : vector<8x128xbf16>, vector<128x128xbf16>, vector<8x128xf32> -> vector<8x128xf32>
    %c0_31 = arith.constant 0 : index
    %c0_32 = arith.constant 0 : index
    %48 = vector.load %arg11[%c0_31, %c0_32] : memref<1x128xf32, #tpu.memory_space<vmem>>, vector<1x128xf32>
    %49 = vector.broadcast %48 : vector<1x128xf32> to vector<8x128xf32>
    %50 = arith.addf %47, %49 : vector<8x128xf32>
    %c0_33 = arith.constant 0 : index
    %c0_34 = arith.constant 0 : index
    %51 = vector.load %arg12[%c0_33, %c0_34] : memref<8x128xf32, #tpu.memory_space<vmem>>, vector<8x128xf32>
    tpu.vector_store %arg12[%c0_33, %c0_34], %50 {strides = array<i32>} : memref<8x128xf32, #tpu.memory_space<vmem>>, vector<8x128xf32>,
    return
  }
  func.func @transform_0(%arg0: i32) -> (i32, i32) {
    %c0_i32 = arith.constant 0 : i32
    %c0_i32_0 = arith.constant 0 : i32
    return %arg0, %c0_i32 : i32, i32
  }
  func.func @transform_1(%arg0: i32) -> (i32, i32) {
    %c0_i32 = arith.constant 0 : i32
    %c0_i32_0 = arith.constant 0 : i32
    %c0_i32_1 = arith.constant 0 : i32
    return %c0_i32, %c0_i32_0 : i32, i32
  }
  func.func @transform_2(%arg0: i32) -> (i32, i32) {
    %c0_i32 = arith.constant 0 : i32
    %c0_i32_0 = arith.constant 0 : i32
    %c0_i32_1 = arith.constant 0 : i32
    return %c0_i32, %c0_i32_0 : i32, i32
  }
  func.func @transform_3(%arg0: i32) -> (i32, i32) {
    %c0_i32 = arith.constant 0 : i32
    %c0_i32_0 = arith.constant 0 : i32
    %c0_i32_1 = arith.constant 0 : i32
    return %c0_i32, %c0_i32_0 : i32, i32
  }
  func.func @transform_4(%arg0: i32) -> (i32, i32) {
    %c0_i32 = arith.constant 0 : i32
    %c0_i32_0 = arith.constant 0 : i32
    %c0_i32_1 = arith.constant 0 : i32
    return %c0_i32, %c0_i32_0 : i32, i32
  }
  func.func @transform_5(%arg0: i32) -> (i32, i32) {
    %c0_i32 = arith.constant 0 : i32
    %c0_i32_0 = arith.constant 0 : i32
    %c0_i32_1 = arith.constant 0 : i32
    return %c0_i32, %c0_i32_0 : i32, i32
  }
  func.func @transform_6(%arg0: i32) -> (i32, i32) {
    %c0_i32 = arith.constant 0 : i32
    %c0_i32_0 = arith.constant 0 : i32
    %c0_i32_1 = arith.constant 0 : i32
    return %c0_i32, %c0_i32_0 : i32, i32
  }
  func.func @transform_7(%arg0: i32) -> (i32, i32) {
    %c0_i32 = arith.constant 0 : i32
    %c0_i32_0 = arith.constant 0 : i32
    %c0_i32_1 = arith.constant 0 : i32
    return %c0_i32, %c0_i32_0 : i32, i32
  }
  func.func @transform_8(%arg0: i32) -> (i32, i32) {
    %c0_i32 = arith.constant 0 : i32
    %c0_i32_0 = arith.constant 0 : i32
    %c0_i32_1 = arith.constant 0 : i32
    return %c0_i32, %c0_i32_0 : i32, i32
  }
  func.func @transform_9(%arg0: i32) -> (i32, i32) {
    %c0_i32 = arith.constant 0 : i32
    %c0_i32_0 = arith.constant 0 : i32
    %c0_i32_1 = arith.constant 0 : i32
    return %c0_i32, %c0_i32_0 : i32, i32
  }
  func.func @transform_10(%arg0: i32) -> (i32, i32) {
    %c0_i32 = arith.constant 0 : i32
    %c0_i32_0 = arith.constant 0 : i32
    %c0_i32_1 = arith.constant 0 : i32
    return %c0_i32, %c0_i32_0 : i32, i32
  }
  func.func @transform_11(%arg0: i32) -> (i32, i32) {
    %c0_i32 = arith.constant 0 : i32
    %c0_i32_0 = arith.constant 0 : i32
    return %arg0, %c0_i32 : i32, i32
  }
}

</mosaic_0001>

<bundles_post_ra>
// kernel: nn_forward.1
= control target key start
LH: loop header
LB: loop body
LE: loop exit
PB: predicated region body
PF: predicated region fallthrough
CT: control target
= control target key end

     0   :  { %16 = vsyncpa [#allocation3], 0  ;;  %s1244_s0 = inlined_call_operand.vmem [shape: f32[8,128], index: 0, kind: input, shape index: {}]   ;;  %s1245_s1 = inlined_call_operand.hbm [shape: bf16[128,128], index: 1, kind: input, shape index: {}]   ;;  %s1246_s2 = inlined_call_operand.vmem [shape: f32[1,128], index: 2, kind: input, shape index: {}]   ;;  %s1247_s3 = inlined_call_operand.hbm [shape: bf16[128,128], index: 3, kind: input, shape index: {}]   ;;  %s1248_s4 = inlined_call_operand.vmem [shape: f32[1,128], index: 4, kind: input, shape index: {}]   ;;  %s1249_s5 = inlined_call_operand.vmem [shape: bf16[128,128], index: 5, kind: input, shape index: {}]   ;;  %s1250_s6 = inlined_call_operand.vmem [shape: f32[1,128], index: 6, kind: input, shape index: {}]   ;;  %s1251_s7 = inlined_call_operand.hbm [shape: bf16[128,128], index: 7, kind: input, shape index: {}]   ;;  %s1252_s8 = inlined_call_operand.vmem [shape: f32[1,128], index: 8, kind: input, shape index: {}]   ;;  %s1253_s9 = inlined_call_operand.hbm [shape: bf16[128,128], index: 9, kind: input, shape index: {}]   ;;  %s1254_s10 = inlined_call_operand.vmem [shape: f32[1,128], index: 10, kind: input, shape index: {}]   ;;  %s1255_s11 = inlined_call_operand.vmem [shape: f32[8,128], index: 11, kind: output, shape index: {}]  }
   0x1   :  { %17 = vsyncpa [#allocation5], 0 }
   0x2   :  { %18 = vsyncpa [#allocation8], 0  ;;  %s1007_s17 = smov [#allocation4]   ;;  %s1008_s19 = smov [#allocation2]  }
   0x3   :  { %s40_s18 = sshll.u32 %s1007_s17, 4  ;;  %s26_s20 = sshll.u32 %s1008_s19, 4  ;;  %s41_s18 = int_to_ptr.vmem [resolvable:$true] %s40_s18  ;;  %s1075_s20 = int_to_ptr.vmem [resolvable:$true] %s26_s20 }
   0x4   :  { %s913_s23 = scalar_lea.hbm %s1247_s3, 1024 }
   0x5   :  { %p914_p0 = scmp.ne.s32.totalorder %s1247_s3, %s913_s23  ;;  %p917_p1 = scmp.lt.u32.totalorder %s913_s23, %s1247_s3 }
   0x7   :  { %p919_p2 = pnand %p917_p1, %p914_p0 }
   0x9   :  { %922 = shalt.err (!%p919_p2)
}
   0xa   :  { %s923_s28 = scalar_lea.vmem %s41_s18, 1024  ;;  %p928_p4 = scmp.lt.s32.totalorder %s41_s18, %s41_s18 }
   0xb   :  { %p924_p3 = scmp.ne.s32.totalorder %s41_s18, %s923_s28  ;;  %p929_p5 = scmp.lt.s32.totalorder %s923_s28, %s923_s28 }
   0xd   :  { %p930_p6 = por %p929_p5, %p928_p4 }
   0xf   :  { %p931_p7 = pnand %p930_p6, %p924_p3 }
  0x11   :  { %934 = shalt.err (!%p931_p7)
}
  0x12   :  { %s1009_s29 = smov 64   ;;  %s1010_s30 = smov 4  }
  0x13   :  { %46 = dma.hbm_to_vmem [thread:$0]  %s1247_s3, 1024, %s41_s18, [#allocation5], %s1009_s29, %s1009_s29, %s1010_s30  }
  0x14   :  { %s935_s16 = scalar_lea.hbm %s1245_s1, 1024 }
  0x15   :  { %p936_p8 = scmp.ne.s32.totalorder %s1245_s1, %s935_s16  ;;  %p939_p9 = scmp.lt.u32.totalorder %s935_s16, %s1245_s1 }
  0x17   :  { %p941_p10 = pnand %p939_p9, %p936_p8 }
  0x19   :  { %944 = shalt.err (!%p941_p10)
}
  0x1a   :  { %s945_s23 = scalar_lea.vmem %s1075_s20, 1024  ;;  %p950_p12 = scmp.lt.s32.totalorder %s1075_s20, %s1075_s20 }
  0x1b   :  { %p946_p11 = scmp.ne.s32.totalorder %s1075_s20, %s945_s23  ;;  %p951_p13 = scmp.lt.s32.totalorder %s945_s23, %s945_s23 }
  0x1d   :  { %p952_p0 = por %p951_p13, %p950_p12 }
  0x1f   :  { %p953_p1 = pnand %p952_p0, %p946_p11 }
  0x21   :  { %956 = shalt.err (!%p953_p1)
}
  0x22   :  { %32 = dma.hbm_to_vmem [thread:$0]  %s1245_s1, 1024, %s1075_s20, [#allocation3], %s1009_s29, %s1009_s29, %s1010_s30  }
  0x23   :  { %s1011_s24 = smov [#allocation6]   ;;  %s1012_s26 = smov [#allocation7]  }
  0x24   :  { %s58_s25 = sshll.u32 %s1011_s24, 4  ;;  %s72_s27 = sshll.u32 %s1012_s26, 4  ;;  %s59_s25 = int_to_ptr.vmem [resolvable:$true] %s58_s25  ;;  %s1112_s27 = int_to_ptr.vmem [resolvable:$true] %s72_s27 }
  0x25   :  { %s957_s13 = scalar_lea.hbm %s1251_s7, 1024 }
  0x26   :  { %p958_p2 = scmp.ne.s32.totalorder %s1251_s7, %s957_s13  ;;  %p961_p3 = scmp.lt.u32.totalorder %s957_s13, %s1251_s7 }
  0x28   :  { %p963_p4 = pnand %p961_p3, %p958_p2 }
  0x2a   :  { %966 = shalt.err (!%p963_p4)
}
  0x2b   :  { %s967_s1 = scalar_lea.vmem %s59_s25, 1024  ;;  %p972_p6 = scmp.lt.s32.totalorder %s59_s25, %s59_s25 }
  0x2c   :  { %p968_p5 = scmp.ne.s32.totalorder %s59_s25, %s967_s1  ;;  %p973_p7 = scmp.lt.s32.totalorder %s967_s1, %s967_s1 }
  0x2e   :  { %p974_p8 = por %p973_p7, %p972_p6 }
  0x30   :  { %p975_p9 = pnand %p974_p8, %p968_p5 }
  0x32   :  { %978 = shalt.err (!%p975_p9)
}
  0x33   :  { %64 = dma.hbm_to_vmem [thread:$0]  %s1251_s7, 1024, %s59_s25, [#allocation5], %s1009_s29, %s1009_s29, %s1010_s30  }
  0x34   :  { %s979_s23 = scalar_lea.hbm %s1253_s9, 1024 }
  0x35   :  { %p980_p10 = scmp.ne.s32.totalorder %s1253_s9, %s979_s23  ;;  %p983_p11 = scmp.lt.u32.totalorder %s979_s23, %s1253_s9 }
  0x37   :  { %p985_p12 = pnand %p983_p11, %p980_p10 }
  0x39   :  { %988 = shalt.err (!%p985_p12)
}
  0x3a   :  { %s989_s28 = scalar_lea.vmem %s1112_s27, 1024  ;;  %p994_p0 = scmp.lt.s32.totalorder %s1112_s27, %s1112_s27 }
  0x3b   :  { %p990_p13 = scmp.ne.s32.totalorder %s1112_s27, %s989_s28  ;;  %p995_p1 = scmp.lt.s32.totalorder %s989_s28, %s989_s28 }
  0x3d   :  { %p996_p2 = por %p995_p1, %p994_p0 }
  0x3f   :  { %p997_p3 = pnand %p996_p2, %p990_p13 }
  0x41   :  { %1000 = shalt.err (!%p997_p3)
}
  0x42   :  { %78 = dma.hbm_to_vmem [thread:$0]  %s1253_s9, 1024, %s1112_s27, [#allocation8], %s1009_s29, %s1009_s29, %s1010_s30  }
  0x43   :  { %1001 = dma.done.wait [#allocation3], 1024  }
  0x44   :  { %1002 = vsyncadd [#allocation3], 4294966272 }
  0x45   :  { %1003 = dma.done.wait [#allocation5], 2048  }
  0x46   :  { %1004 = vsyncadd [#allocation5], 4294965248 }
  0x47   :  { %1005 = dma.done.wait [#allocation8], 1024  }
  0x48   :  { %1006 = vsyncadd [#allocation8], 4294966272  ;;  %v1013_v0 = vmov 0.0   ;;  %vm1014_vm0 = vmmov 0   ;;  %v873_v1 = vld [vmem:[#allocation2] sm:$0xff]   ;;  %v874_v2 = vld [vmem:[#allocation2 + $0x8] sm:$0xff]  }
  0x49   :  { %765 = vmatprep.subr.bf16.mxu0 %v1013_v0  ;;  %781 = vmatprep.mubr.msk.bf16.mxu0 %vm1014_vm0, %v1013_v0  ;;  %v875_v3 = vld [vmem:[#allocation2 + $0x10] sm:$0xff]   ;;  %v881_v4 = vld [vmem:[#allocation4] sm:$0xff]   ;;  %v876_v5 = vld [vmem:[#allocation2 + $0x18] sm:$0xff]  }
  0x4a   :  { %785 = vmatprep.subr.bf16.mxu1 %v1013_v0  ;;  %801 = vmatprep.mubr.msk.bf16.mxu1 %vm1014_vm0, %v1013_v0  ;;  %v882_v6 = vld [vmem:[#allocation4 + $0x8] sm:$0xff]   ;;  %v877_v7 = vld [vmem:[#allocation2 + $0x20] sm:$0xff]   ;;  %v883_v8 = vld [vmem:[#allocation4 + $0x10] sm:$0xff]  }
  0x4b   :  { %766 = vmatpush3.bf16.msra.mxu0 %v873_v1  ;;  %786 = vmatpush3.bf16.msra.mxu1 %v881_v4  ;;  %v878_v9 = vld [vmem:[#allocation2 + $0x28] sm:$0xff]   ;;  %v884_v10 = vld [vmem:[#allocation4 + $0x18] sm:$0xff]   ;;  %v879_v11 = vld [vmem:[#allocation2 + $0x30] sm:$0xff]  }
  0x4c   :  { %767 = vmatprep.subr.bf16.mxu0 %v1013_v0  ;;  %787 = vmatprep.subr.bf16.mxu1 %v1013_v0  ;;  %v885_v12 = vld [vmem:[#allocation4 + $0x20] sm:$0xff]   ;;  %v880_v13 = vld [vmem:[#allocation2 + $0x38] sm:$0xff]   ;;  %v886_v15 = vld [vmem:[#allocation4 + $0x28] sm:$0xff]  }
  0x4d   :  { %v94_v14 = vld [vmem:[%s1244_s0] sm:$0xff]  ;;  %v887_v17 = vld [vmem:[#allocation4 + $0x30] sm:$0xff]   ;;  %v888_v18 = vld [vmem:[#allocation4 + $0x38] sm:$0xff]  }
  0x4e   :  { %v95_v16 = vpack.c.bf16 %v94_v14, %v94_v14  ;;  %v889_v19 = vld [vmem:[%s1249_s5] sm:$0xff]   ;;  %v890_v20 = vld [vmem:[%s1249_s5 + $0x8] sm:$0xff]   ;;  %v891_v21 = vld [vmem:[%s1249_s5 + $0x10] sm:$0xff]  }
  0x4f   :  { %768 = vmatpush3.bf16.msra.mxu0 %v874_v2  ;;  %788 = vmatpush3.bf16.msra.mxu1 %v882_v6  ;;  %v892_v22 = vld [vmem:[%s1249_s5 + $0x18] sm:$0xff]   ;;  %v893_v23 = vld [vmem:[%s1249_s5 + $0x20] sm:$0xff]   ;;  %v894_v24 = vld [vmem:[%s1249_s5 + $0x28] sm:$0xff]  }
  0x50   :  { %769 = vmatprep.subr.bf16.mxu0 %v1013_v0  ;;  %789 = vmatprep.subr.bf16.mxu1 %v1013_v0  ;;  %v675_v25 = vld [vmem:[%s1246_s2] ss:$0 sm:$0xff]  ;;  %v895_v34 = vld [vmem:[%s1249_s5 + $0x30] sm:$0xff]   ;;  %v896_v35 = vld [vmem:[%s1249_s5 + $0x38] sm:$0xff]  }
  0x51   :  { %v897_v36 = vld [vmem:[#allocation6] sm:$0xff]   ;;  %v898_v37 = vld [vmem:[#allocation6 + $0x8] sm:$0xff]   ;;  %v899_v38 = vld [vmem:[#allocation6 + $0x10] sm:$0xff]  }
  0x52   :  { %v900_v39 = vld [vmem:[#allocation6 + $0x18] sm:$0xff]   ;;  %v901_v40 = vld [vmem:[#allocation6 + $0x20] sm:$0xff]   ;;  %v902_v41 = vld [vmem:[#allocation6 + $0x28] sm:$0xff]  }
  0x53   :  { %770 = vmatpush3.bf16.msra.mxu0 %v875_v3  ;;  %790 = vmatpush3.bf16.msra.mxu1 %v883_v8  ;;  %v684_v42 = vld [vmem:[%s1248_s4] ss:$0 sm:$0xff]  ;;  %v903_v51 = vld [vmem:[#allocation6 + $0x30] sm:$0xff]   ;;  %v904_v52 = vld [vmem:[#allocation6 + $0x38] sm:$0xff]  }
  0x54   :  { %771 = vmatprep.subr.bf16.mxu0 %v1013_v0  ;;  %791 = vmatprep.subr.bf16.mxu1 %v1013_v0  ;;  %v905_v53 = vld [vmem:[#allocation7] sm:$0xff]   ;;  %v906_v54 = vld [vmem:[#allocation7 + $0x8] sm:$0xff]   ;;  %v907_v55 = vld [vmem:[#allocation7 + $0x10] sm:$0xff]  }
  0x55   :  { %v908_v56 = vld [vmem:[#allocation7 + $0x18] sm:$0xff]   ;;  %v909_v57 = vld [vmem:[#allocation7 + $0x20] sm:$0xff]   ;;  %v910_v58 = vld [vmem:[#allocation7 + $0x28] sm:$0xff]  }
  0x56   :  { %v693_v59 = vld [vmem:[%s1250_s6] ss:$0 sm:$0xff]  ;;  %v912_v6 = vld [vmem:[#allocation7 + $0x38] sm:$0xff]  }
  0x57   :  { %772 = vmatpush3.bf16.msra.mxu0 %v876_v5  ;;  %792 = vmatpush3.bf16.msra.mxu1 %v884_v10  ;;  %v911_v5 = vld [vmem:[#allocation7 + $0x30] sm:$0xff]  }
  0x58   :  { %773 = vmatprep.subr.bf16.mxu0 %v1013_v0  ;;  %793 = vmatprep.subr.bf16.mxu1 %v1013_v0 }
  0x5b   :  { %774 = vmatpush3.bf16.msra.mxu0 %v877_v7  ;;  %794 = vmatpush3.bf16.msra.mxu1 %v885_v12  ;;  %v702_v7 = vld [vmem:[%s1252_s8] ss:$0 sm:$0xff] }
  0x5c   :  { %775 = vmatprep.subr.bf16.mxu0 %v1013_v0  ;;  %795 = vmatprep.subr.bf16.mxu1 %v1013_v0 }
  0x5f   :  { %776 = vmatpush3.bf16.msra.mxu0 %v878_v9  ;;  %796 = vmatpush3.bf16.msra.mxu1 %v886_v15 }
  0x60   :  { %777 = vmatprep.subr.bf16.mxu0 %v1013_v0  ;;  %797 = vmatprep.subr.bf16.mxu1 %v1013_v0 }
  0x63   :  { %778 = vmatpush3.bf16.msra.mxu0 %v879_v11  ;;  %798 = vmatpush3.bf16.msra.mxu1 %v887_v17 }
  0x64   :  { %779 = vmatprep.subr.bf16.mxu0 %v1013_v0  ;;  %799 = vmatprep.subr.bf16.mxu1 %v1013_v0 }
  0x67   :  { %780 = vmatpush3.bf16.msra.mxu0 %v880_v13  ;;  %800 = vmatpush3.bf16.msra.mxu1 %v888_v18 }
  0x68   :  { %805 = vmatprep.subr.bf16.mxu0 %v1013_v0  ;;  %825 = vmatprep.subr.bf16.mxu1 %v1013_v0 }
  0x6a   :  { %782 = vmatmul.mubr.bf16.vlgmr.msra.gmra.mrb[0].mxu0 %v95_v16 }
  0x6b   :  { %821 = vmatprep.mubr.msk.bf16.mxu0 %vm1014_vm0, %v1013_v0  ;;  %806 = vmatpush3.bf16.msra.mxu0 %v889_v19 }
  0x6c   :  { %807 = vmatprep.subr.bf16.mxu0 %v1013_v0 }
  0x6f   :  { %808 = vmatpush3.bf16.msra.mxu0 %v890_v20 }
  0x70   :  { %809 = vmatprep.subr.bf16.mxu0 %v1013_v0 }
  0x73   :  { %810 = vmatpush3.bf16.msra.mxu0 %v891_v21 }
  0x74   :  { %811 = vmatprep.subr.bf16.mxu0 %v1013_v0 }
  0x77   :  { %812 = vmatpush3.bf16.msra.mxu0 %v892_v22 }
  0x78   :  { %813 = vmatprep.subr.bf16.mxu0 %v1013_v0 }
  0x7b   :  { %814 = vmatpush3.bf16.msra.mxu0 %v893_v23 }
  0x7c   :  { %815 = vmatprep.subr.bf16.mxu0 %v1013_v0 }
  0x7f   :  { %816 = vmatpush3.bf16.msra.mxu0 %v894_v24 }
  0x80   :  { %817 = vmatprep.subr.bf16.mxu0 %v1013_v0 }
  0x83   :  { %818 = vmatpush3.bf16.msra.mxu0 %v895_v34 }
  0x84   :  { %819 = vmatprep.subr.bf16.mxu0 %v1013_v0 }
  0x87   :  { %820 = vmatpush3.bf16.msra.mxu0 %v896_v35 }
  0x88   :  { %845 = vmatprep.subr.bf16.mxu0 %v1013_v0 }
 0x13d   :  { %v201_v26 = vpop.f32.mrb[0].mxu0 }
 0x13e   :  { %v202_v27 = vadd.f32 %v675_v25, %v201_v26  ;;  %v783_v28 = vpop.f32.mrb[1].mxu0 }
 0x13f   :  { %v204_v29 = vpop.f32.mrb[2].mxu0 }
 0x140   :  { %vm207_vm1 = vcmp.gt.f32.partialorder %v202_v27, 0.0  ;;  %v208_v30 = vmul.f32 0.01, %v202_v27  ;;  %v784_v31 = vpop.f32.mrb[3].mxu0 }
 0x142   :  { %v209_v32 = vsel %vm207_vm1, %v202_v27, %v208_v30 }
 0x143   :  { %v210_v33 = vpack.c.bf16 %v209_v32, %v209_v32 }
 0x145   :  { %802 = vmatmul.mubr.bf16.vlgmr.msra.gmra.mrb[0].mxu1 %v210_v33 }
 0x146   :  { %841 = vmatprep.mubr.msk.bf16.mxu1 %vm1014_vm0, %v1013_v0  ;;  %826 = vmatpush3.bf16.msra.mxu1 %v897_v36 }
 0x147   :  { %827 = vmatprep.subr.bf16.mxu1 %v1013_v0 }
 0x14a   :  { %828 = vmatpush3.bf16.msra.mxu1 %v898_v37 }
 0x14b   :  { %829 = vmatprep.subr.bf16.mxu1 %v1013_v0 }
 0x14e   :  { %830 = vmatpush3.bf16.msra.mxu1 %v899_v38 }
 0x14f   :  { %831 = vmatprep.subr.bf16.mxu1 %v1013_v0 }
 0x152   :  { %832 = vmatpush3.bf16.msra.mxu1 %v900_v39 }
 0x153   :  { %833 = vmatprep.subr.bf16.mxu1 %v1013_v0 }
 0x156   :  { %834 = vmatpush3.bf16.msra.mxu1 %v901_v40 }
 0x157   :  { %835 = vmatprep.subr.bf16.mxu1 %v1013_v0 }
 0x15a   :  { %836 = vmatpush3.bf16.msra.mxu1 %v902_v41 }
 0x15b   :  { %837 = vmatprep.subr.bf16.mxu1 %v1013_v0 }
 0x15e   :  { %838 = vmatpush3.bf16.msra.mxu1 %v903_v51 }
 0x15f   :  { %839 = vmatprep.subr.bf16.mxu1 %v1013_v0 }
 0x162   :  { %840 = vmatpush3.bf16.msra.mxu1 %v904_v52 }
 0x218   :  { %v316_v43 = vpop.f32.mrb[0].mxu1 }
 0x219   :  { %v317_v44 = vadd.f32 %v684_v42, %v316_v43  ;;  %v803_v45 = vpop.f32.mrb[1].mxu1 }
 0x21a   :  { %v319_v46 = vpop.f32.mrb[2].mxu1 }
 0x21b   :  { %vm322_vm2 = vcmp.gt.f32.partialorder %v317_v44, 0.0  ;;  %v323_v47 = vmul.f32 0.01, %v317_v44  ;;  %v804_v48 = vpop.f32.mrb[3].mxu1 }
 0x21d   :  { %v324_v49 = vsel %vm322_vm2, %v317_v44, %v323_v47 }
 0x21e   :  { %v325_v50 = vpack.c.bf16 %v324_v49, %v324_v49 }
 0x220   :  { %822 = vmatmul.mubr.bf16.vlgmr.msra.gmra.mrb[4].mxu0 %v325_v50 }
 0x221   :  { %861 = vmatprep.mubr.msk.bf16.mxu0 %vm1014_vm0, %v1013_v0  ;;  %846 = vmatpush3.bf16.msra.mxu0 %v905_v53 }
 0x222   :  { %847 = vmatprep.subr.bf16.mxu0 %v1013_v0 }
 0x225   :  { %848 = vmatpush3.bf16.msra.mxu0 %v906_v54 }
 0x226   :  { %849 = vmatprep.subr.bf16.mxu0 %v1013_v0 }
 0x229   :  { %850 = vmatpush3.bf16.msra.mxu0 %v907_v55 }
 0x22a   :  { %851 = vmatprep.subr.bf16.mxu0 %v1013_v0 }
 0x22d   :  { %852 = vmatpush3.bf16.msra.mxu0 %v908_v56 }
 0x22e   :  { %853 = vmatprep.subr.bf16.mxu0 %v1013_v0 }
 0x231   :  { %854 = vmatpush3.bf16.msra.mxu0 %v909_v57 }
 0x232   :  { %855 = vmatprep.subr.bf16.mxu0 %v1013_v0 }
 0x235   :  { %856 = vmatpush3.bf16.msra.mxu0 %v910_v58 }
 0x236   :  { %857 = vmatprep.subr.bf16.mxu0 %v1013_v0 }
 0x239   :  { %858 = vmatpush3.bf16.msra.mxu0 %v911_v5 }
 0x23a   :  { %859 = vmatprep.subr.bf16.mxu0 %v1013_v0  ;;  %v711_v0 = vld [vmem:[%s1254_s10] ss:$0 sm:$0xff] }
 0x23d   :  { %860 = vmatpush3.bf16.msra.mxu0 %v912_v6 }
 0x2f3   :  { %v431_v60 = vpop.f32.mrb[4].mxu0 }
 0x2f4   :  { %v432_v61 = vadd.f32 %v693_v59, %v431_v60  ;;  %v823_v62 = vpop.f32.mrb[5].mxu0 }
 0x2f5   :  { %v434_v63 = vpop.f32.mrb[6].mxu0 }
 0x2f6   :  { %vm437_vm3 = vcmp.gt.f32.partialorder %v432_v61, 0.0  ;;  %v438_v1 = vmul.f32 0.01, %v432_v61  ;;  %v824_v2 = vpop.f32.mrb[7].mxu0 }
 0x2f8   :  { %v439_v3 = vsel %vm437_vm3, %v432_v61, %v438_v1 }
 0x2f9   :  { %v440_v4 = vpack.c.bf16 %v439_v3, %v439_v3 }
 0x2fb   :  { %842 = vmatmul.mubr.bf16.vlgmr.msra.gmra.mrb[4].mxu1 %v440_v4 }
 0x3ce   :  { %v546_v8 = vpop.f32.mrb[4].mxu1 }
 0x3cf   :  { %v547_v9 = vadd.f32 %v702_v7, %v546_v8  ;;  %v843_v10 = vpop.f32.mrb[5].mxu1 }
 0x3d0   :  { %v549_v11 = vpop.f32.mrb[6].mxu1 }
 0x3d1   :  { %vm552_vm4 = vcmp.gt.f32.partialorder %v547_v9, 0.0  ;;  %v553_v12 = vmul.f32 0.01, %v547_v9  ;;  %v844_v13 = vpop.f32.mrb[7].mxu1 }
 0x3d3   :  { %v554_v14 = vsel %vm552_vm4, %v547_v9, %v553_v12 }
 0x3d4   :  { %v555_v15 = vpack.c.bf16 %v554_v14, %v554_v14 }
 0x3d6   :  { %862 = vmatmul.mubr.bf16.vlgmr.msra.gmra.mrb[8].mxu0 %v555_v15 }
 0x4a9   :  { %v661_v16 = vpop.f32.mrb[8].mxu0 }
 0x4aa   :  { %v662_v17 = vadd.f32 %v711_v0, %v661_v16  ;;  %v863_v18 = vpop.f32.mrb[9].mxu0 }
 0x4ab   :  { %v664_v19 = vpop.f32.mrb[10].mxu0 }
 0x4ac   :  { %667 = vst [vmem:[%s1255_s11] sm:$0xff] %v662_v17  ;;  %v864_v20 = vpop.f32.mrb[11].mxu0 }
 0x4ad   :  { %672 = vsyncpa [#allocation3], 1 }
 0x4ae   :  { %673 = vsyncpa [#allocation5], 1 }
 0x4af   :  { %674 = vsyncpa [#allocation8], 1 }

</bundles_post_ra>
